<compile_context>
chip_gen: v5e
topology: v5e:2x2
jax: 0.10.0
libtpu: 0.0.40
codegen_flags: <defaults>
</compile_context>

<pallas_src>
import math

import jax
import jax.numpy as jnp
from jax.experimental import pallas as pl
from jax.experimental.pallas import tpu as pltpu


def _round_up(x, m):
    return (x + m - 1) // m * m


def _pad2(a, rows, cols):
    r, c = a.shape
    if r == rows and c == cols:
        return a
    return jnp.pad(a, ((0, rows - r), (0, cols - c)))


# ---------------------------------------------------------------------------
# Kernels
# ---------------------------------------------------------------------------
def _ridge_kernel_single(x_ref, wt_ref, b_ref, o_ref):
    # x_ref : (Mp, Kp), wt_ref : (Kp, Np), b_ref : (1, Np), o_ref : (Mp, Np)
    y = jnp.dot(x_ref[...], wt_ref[...], preferred_element_type=jnp.float32)
    o_ref[...] = (y + b_ref[...]).astype(o_ref.dtype)


def _ridge_kernel_tiled(x_ref, wt_ref, b_ref, o_ref, acc_ref):
    # Grid: (M/tm, N/tn, K/tk), reduction axis (K) last.
    k = pl.program_id(2)

    @pl.when(k == 0)
    def _():
        acc_ref[...] = jnp.zeros_like(acc_ref)

    acc_ref[...] += jnp.dot(
        x_ref[...], wt_ref[...], preferred_element_type=jnp.float32
    )

    @pl.when(k == pl.num_programs(2) - 1)
    def _():
        o_ref[...] = (acc_ref[...] + b_ref[...]).astype(o_ref.dtype)


# ---------------------------------------------------------------------------
# Wrapper
# ---------------------------------------------------------------------------
# Conservative f32-operand budget for the gridless single-block path.
_SINGLE_BLOCK_VMEM_BUDGET = 4 * 1024 * 1024  # bytes


def ridge_regression(x, weight, bias, *, tm=512, tn=512, tk=512):
    """y = x @ weight.T + bias (torch.nn.Linear semantics) via Pallas TPU kernels."""
    B, D_in = x.shape
    D_out, D_in_w = weight.shape
    assert D_in == D_in_w and bias.shape == (D_out,)

    # Pre-transpose once in the wrapper: contract K against K in natural layout.
    wt = weight.T  # (D_in, D_out)

    # Lane/sublane-aligned padded sizes (zero padding along K is exact).
    Mp = _round_up(B, 8)
    Kp = _round_up(D_in, 128)
    Np = _round_up(D_out, 128)

    footprint = 4 * (Mp * Kp + Kp * Np + Np + Mp * Np)
    if footprint <= _SINGLE_BLOCK_VMEM_BUDGET:
        # ---- gridless single-block path (no pipeline / grid overhead) ----
        xp = _pad2(x, Mp, Kp)
        wtp = _pad2(wt, Kp, Np)
        bp = jnp.pad(bias, (0, Np - D_out)).reshape(1, Np) if Np != D_out \
            else bias.reshape(1, Np)
        y = pl.pallas_call(
            _ridge_kernel_single,
            out_shape=jax.ShapeDtypeStruct((Mp, Np), x.dtype),
        )(xp, wtp, bp)
        return y[:B, :D_out]

    # ---- tiled path for realistic sizes ----
    tm = min(tm, _round_up(B, 8))        # sublane-aligned M tile
    tn = min(tn, _round_up(D_out, 128))  # lane-dense N tile
    tk = min(tk, _round_up(D_in, 128))   # lane-aligned K tile
    Mp = _round_up(B, tm)
    Np = _round_up(D_out, tn)
    Kp = _round_up(D_in, tk)

    xp = _pad2(x, Mp, Kp)
    wtp = _pad2(wt, Kp, Np)
    bp = jnp.pad(bias, (0, Np - D_out)).reshape(1, Np) if Np != D_out \
        else bias.reshape(1, Np)

    grid = (Mp // tm, Np // tn, Kp // tk)
    y = pl.pallas_call(
        _ridge_kernel_tiled,
        out_shape=jax.ShapeDtypeStruct((Mp, Np), x.dtype),
        grid_spec=pltpu.PrefetchScalarGridSpec(
            num_scalar_prefetch=0,
            grid=grid,
            in_specs=[
                pl.BlockSpec((tm, tk), lambda i, j, k: (i, k)),
                pl.BlockSpec((tk, tn), lambda i, j, k: (k, j)),
                pl.BlockSpec((1, tn), lambda i, j, k: (0, j)),
            ],
            out_specs=pl.BlockSpec((tm, tn), lambda i, j, k: (i, j)),
            scratch_shapes=[pltpu.VMEM((tm, tn), jnp.float32)],
        ),
        compiler_params=pltpu.CompilerParams(
            dimension_semantics=("parallel", "parallel", "arbitrary"),
            vmem_limit_bytes=64 * 1024 * 1024,
        ),
    )(xp, wtp, bp)
    return y[:B, :D_out]


def init_params(key, input_size, out_features):
    """Deterministic init matching torch.nn.Linear default (uniform(-k, k), k=1/sqrt(fan_in))."""
    kw, kb = jax.random.split(key)
    bound = 1.0 / math.sqrt(input_size)
    weight = jax.random.uniform(
        kw, (out_features, input_size), jnp.float32, minval=-bound, maxval=bound
    )
    bias = jax.random.uniform(
        kb, (out_features,), jnp.float32, minval=-bound, maxval=bound
    )
    return weight, bias


if __name__ == "__main__":
    key = jax.random.PRNGKey(0)
    k_x, k_p, k_x2, k_p2 = jax.random.split(key, 4)

    # ---- small shapes from the module spec (exercises gridless path) ----
    batch, input_size, out_features = 8, 32, 16
    x = jax.random.normal(k_x, (batch, input_size), dtype=jnp.float32)
    weight, bias = init_params(k_p, input_size, out_features)

    y = jax.block_until_ready(ridge_regression(x, weight, bias))
    y_ref = x @ weight.T + bias
    assert y.shape == (batch, out_features)
    # Tolerance accounts for MXU default-precision matmul on f32 inputs.
    assert jnp.allclose(y, y_ref, atol=1e-4, rtol=1e-4)

    # ---- moderate shapes exercising the tiled (M, N, K)-grid path ----
    B2, D_in2, D_out2 = 1024, 1024, 512
    x2 = jax.random.normal(k_x2, (B2, D_in2), dtype=jnp.float32)
    w2, b2 = init_params(k_p2, D_in2, D_out2)
    y2 = jax.block_until_ready(ridge_regression(x2, w2, b2))
    y2_ref = x2 @ w2.T + b2
    assert y2.shape == (B2, D_out2)
    # Looser tolerance: bf16-pass MXU decomposition + different accumulation
    # order (K split across grid steps) vs. the single XLA dot reference.
    assert jnp.allclose(y2, y2_ref, atol=1e-2, rtol=1e-2)

    print("KERNEL_OK")
</pallas_src>

<mosaic_0001>
module attributes {stable_mosaic.version = 11 : i64} {
  func.func @_ridge_kernel_single(%arg0: memref<8x128xf32, #tpu.memory_space<vmem>>, %arg1: memref<128x128xf32, #tpu.memory_space<vmem>>, %arg2: memref<1x128xf32, #tpu.memory_space<vmem>>, %arg3: memref<8x128xf32, #tpu.memory_space<vmem>>) attributes {dimension_semantics = [], scalar_prefetch = 0 : i64, scratch_operands = 0 : i64, tpu.core_type = #tpu.core_type<tc>} {
    %c0 = arith.constant 0 : index
    %c0_0 = arith.constant 0 : index
    %0 = vector.load %arg0[%c0, %c0_0] : memref<8x128xf32, #tpu.memory_space<vmem>>, vector<8x128xf32>
    %c0_1 = arith.constant 0 : index
    %c0_2 = arith.constant 0 : index
    %1 = vector.load %arg1[%c0_1, %c0_2] : memref<128x128xf32, #tpu.memory_space<vmem>>, vector<128x128xf32>
    %cst = arith.constant dense<0.000000e+00> : vector<8x128xf32>
    %2 = tpu.matmul %0, %1, %cst {dimension_numbers = #tpu.dot_dimension_numbers<[1], [0], [0], [1], [0, 0, 1, 1], [], []>} : vector<8x128xf32>, vector<128x128xf32>, vector<8x128xf32> -> vector<8x128xf32>
    %c0_3 = arith.constant 0 : index
    %c0_4 = arith.constant 0 : index
    %3 = vector.load %arg2[%c0_3, %c0_4] : memref<1x128xf32, #tpu.memory_space<vmem>>, vector<1x128xf32>
    %4 = vector.broadcast %3 : vector<1x128xf32> to vector<8x128xf32>
    %5 = arith.addf %2, %4 : vector<8x128xf32>
    %c0_5 = arith.constant 0 : index
    %c0_6 = arith.constant 0 : index
    %6 = vector.load %arg3[%c0_5, %c0_6] : memref<8x128xf32, #tpu.memory_space<vmem>>, vector<8x128xf32>
    tpu.vector_store %arg3[%c0_5, %c0_6], %5 {strides = array<i32>} : memref<8x128xf32, #tpu.memory_space<vmem>>, vector<8x128xf32>,
    return
  }
}

</mosaic_0001>

<bundles_post_ra>
// kernel: tpu_custom_call.1
= control target key start
LH: loop header
LB: loop body
LE: loop exit
PB: predicated region body
PF: predicated region fallthrough
CT: control target
= control target key end

     0   :  { %8 = vsyncpa [#allocation3], 0  ;;  %s226_s0 = inlined_call_operand.hbm [shape: f32[8,128], index: 0, kind: input, shape index: {}]   ;;  %s227_s1 = inlined_call_operand.hbm [shape: f32[128,128], index: 1, kind: input, shape index: {}]   ;;  %s228_s2 = inlined_call_operand.vmem [shape: f32[1,128], index: 2, kind: input, shape index: {}]   ;;  %s229_s3 = inlined_call_operand.hbm [shape: f32[8,128], index: 3, kind: output, shape index: {}]  }
   0x1   :  { %9 = vsyncpa [#allocation6], 0 }
   0x2   :  { %10 = vsyncpa [#allocation4], 0  ;;  %s16_s14 = sshll.u32 %s226_s0, 4  ;;  %s189_s15 = smov [#allocation2]   ;;  %s17_s14 = int_to_ptr.hbm [resolvable:$true] %s16_s14 }
   0x3   :  { %s18_s16 = sshll.u32 %s189_s15, 4  ;;  %s26_s19 = sshll.u32 %s227_s1, 4  ;;  %s19_s16 = int_to_ptr.vmem [resolvable:$true] %s18_s16  ;;  %s27_s19 = int_to_ptr.hbm [resolvable:$true] %s26_s19 }
   0x4   :  { %21 = dma.hbm_to_vmem [thread:$0]  %s17_s14, 128, %s19_s16, [#allocation3]  }
   0x5   :  { %s190_s20 = smov [#allocation5]   ;;  %s191_s22 = smov 128  }
   0x6   :  { %s28_s21 = sshll.u32 %s190_s20, 4  ;;  %s192_s23 = smov 8   ;;  %s29_s21 = int_to_ptr.vmem [resolvable:$true] %s28_s21 }
   0x7   :  { %34 = dma.hbm_to_vmem [thread:$0]  %s27_s19, 2048, %s29_s21, [#allocation6], %s191_s22, %s191_s22, %s192_s23  }
   0x8   :  { %183 = dma.done.wait [#allocation3], 128  }
   0x9   :  { %184 = vsyncadd [#allocation3], 4294967168 }
   0xa   :  { %185 = dma.done.wait [#allocation6], 2048  }
   0xb   :  { %186 = vsyncadd [#allocation6], 4294965248  ;;  %v61_v0 = vld [vmem:[#allocation5 + $0x78] sm:$0xff]  ;;  %v60_v1 = vld [vmem:[#allocation5 + $0x70] sm:$0xff]  ;;  %s193_s24 = smov [#allocation7]   ;;  %s94_s28 = sshll.u32 %s229_s3, 4  ;;  %s95_s28 = int_to_ptr.hbm [resolvable:$true] %s94_s28 }
   0xc   :  { %66 = vmatpush.msra.mxu0 %v61_v0  ;;  %v59_v2 = vld [vmem:[#allocation5 + $0x68] sm:$0xff]  ;;  %v58_v3 = vld [vmem:[#allocation5 + $0x60] sm:$0xff]  ;;  %v57_v4 = vld [vmem:[#allocation5 + $0x58] sm:$0xff]  ;;  %s92_s25 = sshll.u32 %s193_s24, 4  ;;  %s93_s25 = int_to_ptr.vmem [resolvable:$true] %s92_s25 }
   0xd   :  { %v56_v5 = vld [vmem:[#allocation5 + $0x50] sm:$0xff]  ;;  %v55_v6 = vld [vmem:[#allocation5 + $0x48] sm:$0xff]  ;;  %v54_v7 = vld [vmem:[#allocation5 + $0x40] sm:$0xff] }
   0xe   :  { %67 = vmatpush.msra.mxu0 %v60_v1  ;;  %v53_v8 = vld [vmem:[#allocation5 + $0x38] sm:$0xff]  ;;  %v52_v9 = vld [vmem:[#allocation5 + $0x30] sm:$0xff]  ;;  %v51_v10 = vld [vmem:[#allocation5 + $0x28] sm:$0xff] }
   0xf   :  { %v50_v11 = vld [vmem:[#allocation5 + $0x20] sm:$0xff]  ;;  %v49_v12 = vld [vmem:[#allocation5 + $0x18] sm:$0xff]  ;;  %v48_v13 = vld [vmem:[#allocation5 + $0x10] sm:$0xff] }
  0x10   :  { %68 = vmatpush.msra.mxu0 %v59_v2  ;;  %v47_v14 = vld [vmem:[#allocation5 + $0x8] sm:$0xff]  ;;  %v46_v15 = vld [vmem:[#allocation5] sm:$0xff]  ;;  %v45_v16 = vld [vmem:[#allocation2] sm:$0xff] }
  0x11   :  { %v110_v17 = vld [vmem:[%s228_s2] ss:$0 sm:$0xff] }
  0x12   :  { %69 = vmatpush.msra.mxu0 %v58_v3 }
  0x14   :  { %70 = vmatpush.msra.mxu0 %v57_v4 }
  0x16   :  { %71 = vmatpush.msra.mxu0 %v56_v5 }
  0x18   :  { %72 = vmatpush.msra.mxu0 %v55_v6 }
  0x1a   :  { %73 = vmatpush.msra.mxu0 %v54_v7 }
  0x1c   :  { %74 = vmatpush.msra.mxu0 %v53_v8 }
  0x1e   :  { %75 = vmatpush.msra.mxu0 %v52_v9 }
  0x20   :  { %76 = vmatpush.msra.mxu0 %v51_v10 }
  0x22   :  { %77 = vmatpush.msra.mxu0 %v50_v11 }
  0x24   :  { %78 = vmatpush.msra.mxu0 %v49_v12 }
  0x26   :  { %79 = vmatpush.msra.mxu0 %v48_v13 }
  0x28   :  { %80 = vmatpush.msra.mxu0 %v47_v14 }
  0x2a   :  { %81 = vmatpush.msra.mxu0 %v46_v15 }
  0x2b   :  { %82 = vmatmul.f32.vlgmr.msra.gmra.mxu0 %v45_v16 }
  0xa8   :  { %v83_v18 = vpop.f32.mrf.mxu0 }
  0xa9   :  { %v84_v19 = vadd.f32 %v110_v17, %v83_v18 }
  0xab   :  { %86 = vst [vmem:[#allocation7] sm:$0xff] %v84_v19 }
  0xac   :  { %97 = dma.vmem_to_hbm [thread:$0]  %s93_s25, 128, %s95_s28, [#allocation4]  }
  0xad   :  { %187 = dma.done.wait [#allocation4], 128  }
  0xae   :  { %188 = vsyncadd [#allocation4], 4294967168 }
  0xaf   :  { %102 = vsyncpa [#allocation3], 1 }
  0xb0   :  { %103 = vsyncpa [#allocation6], 1 }
  0xb1   :  { %104 = vsyncpa [#allocation4], 1 }

</bundles_post_ra>
